<compile_context>
chip_gen: v7x
topology: tpu7x:2x2x1
jax: 0.10.0
libtpu: 0.0.40
codegen_flags: <defaults>
</compile_context>

<pallas_src>
import functools

import jax
import jax.numpy as jnp
from jax.experimental import pallas as pl
from jax.experimental.pallas import tpu as pltpu


def _layer_norm(v, w, b, eps=1e-5):
    mu = jnp.mean(v, axis=-1, keepdims=True)
    c = v - mu
    var = jnp.mean(c * c, axis=-1, keepdims=True)
    return c * jax.lax.rsqrt(var + eps) * w + b


def block_kernel(x_ref, prm_ref, ln1w_ref, ln1b_ref, w_in_ref, b_in_ref,
                 w_o_ref, b_o_ref, ln2w_ref, ln2b_ref,
                 w_fc_ref, b_fc_ref, w_pr_ref, b_pr_ref,
                 o_ref, *, n_head, pad):
    tb, N, D = x_ref.shape
    H = n_head
    dh = D // H
    P = prm_ref.shape[0]          # prompt length (4)
    hp = P // 2                   # 2 prompt tokens front / back
    Lp = N + P + pad              # padded prompted length (multiple of 8)

    # --- assemble the padded (tb, Lp, D) slab in VMEM:
    #     [prompt[:2] | x | prompt[2:] | zero pad]  (no per-layer HBM round trip)
    prm = prm_ref[...]
    parts = [jnp.broadcast_to(prm[None, :hp, :], (tb, hp, D)),
             x_ref[...],
             jnp.broadcast_to(prm[None, hp:, :], (tb, P - hp, D))]
    if pad:
        parts.append(jnp.zeros((tb, pad, D), jnp.float32))
    x3 = jnp.concatenate(parts, axis=1)                                  # (tb, Lp, D) f32
    x = x3.reshape(tb * Lp, D)                                           # leading-dim merge: free

    # --- LN1 (f32) + fused QKV projection (bf16 MXU, f32 accumulate).
    #     1/sqrt(dh) is pre-folded into the Q columns of w_in / b_in.
    xn = _layer_norm(x, ln1w_ref[0], ln1b_ref[0])
    qkv = jnp.dot(xn.astype(jnp.bfloat16), w_in_ref[...],
                  preferred_element_type=jnp.float32) + b_in_ref[0]      # (tb*Lp, 3D) f32

    q3 = qkv[:, 0:D].reshape(tb, Lp, D).astype(jnp.bfloat16)
    k3 = qkv[:, D:2 * D].reshape(tb, Lp, D).astype(jnp.bfloat16)
    v3 = qkv[:, 2 * D:3 * D].reshape(tb, Lp, D).astype(jnp.bfloat16)

    # Causal triu(1) = -inf mask (PyTorch `except` path for the prompted length).
    # Padded key columns sit strictly above the diagonal for every real query row,
    # so the causal mask also removes the padding.  Mask addition stays in f32.
    row = jax.lax.broadcasted_iota(jnp.int32, (Lp, Lp), 0)
    col = jax.lax.broadcasted_iota(jnp.int32, (Lp, Lp), 1)
    neg = jnp.where(col > row, jnp.float32(-1e30), jnp.float32(0.0))[None]

    # Per-head attention, batched over the tb batch tile with single-batch-dim
    # dot_generals; head slices are contiguous lane slices (no per-element stacks).
    ctx = []
    for h in range(H):
        sl = slice(h * dh, (h + 1) * dh)
        s = jnp.einsum('bld,bmd->blm', q3[:, :, sl], k3[:, :, sl],
                       preferred_element_type=jnp.float32)               # (tb, Lp, Lp)
        s = s + neg
        s = s - jnp.max(s, axis=-1, keepdims=True)
        p = jnp.exp(s)
        p = p * (1.0 / jnp.sum(p, axis=-1, keepdims=True))               # exact softmax denom
        ctx.append(jnp.einsum('blm,bmd->bld', p.astype(jnp.bfloat16), v3[:, :, sl],
                              preferred_element_type=jnp.float32))       # (tb, Lp, dh)
    attn = jnp.concatenate(ctx, axis=-1).reshape(tb * Lp, D)             # merge heads (lane concat)

    attn = jnp.dot(attn.astype(jnp.bfloat16), w_o_ref[...],
                   preferred_element_type=jnp.float32) + b_o_ref[0]
    x = x + attn

    # --- LN2 + MLP (c_fc -> QuickGELU -> c_proj) + residual.
    xn2 = _layer_norm(x, ln2w_ref[0], ln2b_ref[0])
    h1 = jnp.dot(xn2.astype(jnp.bfloat16), w_fc_ref[...],
                 preferred_element_type=jnp.float32) + b_fc_ref[0]
    # QuickGELU: x * sigmoid(1.702 x) = x * 0.5*(1 + tanh(0.851 x))  -> one EUP op
    h1 = h1 * (0.5 * (1.0 + jnp.tanh(0.851 * h1)))
    mlp = jnp.dot(h1.astype(jnp.bfloat16), w_pr_ref[...],
                  preferred_element_type=jnp.float32) + b_pr_ref[0]
    x = x + mlp

    # Single lane-dense store of the prompt-stripped rows.
    o_ref[...] = x.reshape(tb, Lp, D)[:, hp:hp + N, :]


def _working_set_bytes(tb, Lp, N, D):
    # Rough per-step f32 residency: x/xn/qkv/q/k/v/attn/h1 slabs + one head's scores
    act = tb * Lp * (16 * D + 3 * Lp) * 4
    io = 2 * 2 * tb * N * D * 4          # double-buffered input + output blocks
    return act + io


def _weight_bytes(D):
    mats = (3 * D * D + D * D + 4 * D * D + 4 * D * D) * 2               # bf16, single-buffered
    vecs = (3 * D + D + 4 * D + D + 2 * D + 2 * D + 4 * D) * 4           # f32 biases / LN / prompt
    return mats + vecs


def _pick_batch_tile(B, Lp, N, D, n_cores=2, act_cap=40 * 1024 * 1024):
    """Largest divisor tb of B that (a) keeps grid >= 2 when B >= 2 so both v7x
    TensorCores get work, and (b) keeps the per-step working set under act_cap."""
    best = 1
    for t in range(1, B + 1):
        if B % t:
            continue
        if B >= n_cores and (B // t) < n_cores:
            continue
        if _working_set_bytes(t, Lp, N, D) > act_cap:
            continue
        best = t
    return best


def _const_index_map(nd):
    def idx(b):
        return (0,) * nd
    return idx


def run_block(xb, prm, p, n_head):
    """xb: (B, N, D) f32; prm: (P, D) f32 prompt for this layer.  One grid step
    runs the full residual block for a (tb, N, D) batch tile entirely in VMEM."""
    B, N, D = xb.shape
    P = prm.shape[0]
    La = N + P
    Lp = ((La + 7) // 8) * 8                 # pad prompted length to sublane multiple
    pad = Lp - La
    tb = _pick_batch_tile(B, Lp, N, D)
    H = n_head

    kern = functools.partial(block_kernel, n_head=n_head, pad=pad)

    def csp(shape):
        # Constant-index blocks (weights / biases / prompt): fetched once, single
        # VMEM buffer (they never change across the grid).
        return pl.BlockSpec(shape, _const_index_map(len(shape)),
                            pipeline_mode=pl.Buffered(1))

    flops = int(24 * B * Lp * D * D + 4 * B * Lp * Lp * D)
    transcendentals = int(B * H * Lp * Lp + 4 * B * Lp * D + 2 * B * Lp)
    bytes_accessed = int(_weight_bytes(D) + 2 * B * N * D * 4 + P * D * 4)

    vmem_limit = max(32 * 1024 * 1024,
                     min(int(1.5 * (_weight_bytes(D) + _working_set_bytes(tb, Lp, N, D))),
                         64 * 1024 * 1024))   # stay within v7x's 64 MiB physical VMEM

    return pl.pallas_call(
        kern,
        out_shape=jax.ShapeDtypeStruct((B, N, D), jnp.float32),
        grid=(B // tb,),
        in_specs=[
            pl.BlockSpec((tb, N, D), lambda b: (b, 0, 0)),   # x (batch tile)
            csp((P, D)),                                     # prompt (f32)
            csp((1, D)), csp((1, D)),                        # ln1 w, b         (f32)
            csp((D, 3 * D)), csp((1, 3 * D)),                # in_proj W (bf16), b (f32)
            csp((D, D)), csp((1, D)),                        # out_proj W (bf16), b
            csp((1, D)), csp((1, D)),                        # ln2 w, b         (f32)
            csp((D, 4 * D)), csp((1, 4 * D)),                # c_fc W (bf16), b
            csp((4 * D, D)), csp((1, D)),                    # c_proj W (bf16), b
        ],
        out_specs=pl.BlockSpec((tb, N, D), lambda b: (b, 0, 0)),
        compiler_params=pltpu.CompilerParams(
            dimension_semantics=("parallel",),
            vmem_limit_bytes=vmem_limit,
        ),
        cost_estimate=pl.CostEstimate(
            flops=flops, transcendentals=transcendentals,
            bytes_accessed=bytes_accessed),
    )(xb, prm, p['ln1_w'], p['ln1_b'], p['w_in'], p['b_in'],
      p['w_o'], p['b_o'], p['ln2_w'], p['ln2_b'],
      p['w_fc'], p['b_fc'], p['w_proj'], p['b_proj'])


def transformer_text(x, params, n_head):
    """x: (N, B, D) (nn.MultiheadAttention layout).  The layout transpose is done
    once on entry and once on exit; layers operate on (B, N, D)."""
    xb = jnp.transpose(x, (1, 0, 2))                                     # (B, N, D)
    B = xb.shape[0]
    for p in params:
        # Static-B dispatch matching PyTorch (prompt_tx for B != 1, prompt_tx_t for
        # B == 1).  Resolved at trace time; not valid under vmap / traced batch.
        prm = p['prompt_tx'] if B != 1 else p['prompt_tx_t']
        xb = run_block(xb, prm, p, n_head)
    return jnp.transpose(xb, (1, 0, 2))                                  # (N, B, D)


def prepare_params(params, n_head):
    """One-time parameter prep (call OUTSIDE jit / the layer loop):
      * fold 1/sqrt(dh) into the Q columns of in_proj weight & bias,
      * cast the four matmul weights to bf16 (MXU feeds) once,
      * reshape prompts to (4, D)."""
    out = []
    for p in params:
        D = p['w_in'].shape[0]
        dh = D // n_head
        scale = 1.0 / (dh ** 0.5)
        col_scale = jnp.concatenate(
            [jnp.full((D,), scale, jnp.float32), jnp.ones((2 * D,), jnp.float32)])
        q = dict(p)
        q['w_in'] = (p['w_in'] * col_scale[None, :]).astype(jnp.bfloat16)
        q['b_in'] = (p['b_in'] * col_scale[None, :]).astype(jnp.float32)
        q['w_o'] = p['w_o'].astype(jnp.bfloat16)
        q['w_fc'] = p['w_fc'].astype(jnp.bfloat16)
        q['w_proj'] = p['w_proj'].astype(jnp.bfloat16)
        q['prompt_tx'] = p['prompt_tx'].reshape(-1, D).astype(jnp.float32)
        q['prompt_tx_t'] = p['prompt_tx_t'].reshape(-1, D).astype(jnp.float32)
        out.append(q)
    return out


def init_params(key, D, n_layers):
    params = []
    scale = 0.02
    for i in range(n_layers):
        ks = jax.random.split(jax.random.fold_in(key, i), 6)
        params.append(dict(
            ln1_w=jnp.ones((1, D), jnp.float32),
            ln1_b=jnp.zeros((1, D), jnp.float32),
            w_in=scale * jax.random.normal(ks[0], (D, 3 * D), jnp.float32),
            b_in=jnp.zeros((1, 3 * D), jnp.float32),
            w_o=scale * jax.random.normal(ks[1], (D, D), jnp.float32),
            b_o=jnp.zeros((1, D), jnp.float32),
            ln2_w=jnp.ones((1, D), jnp.float32),
            ln2_b=jnp.zeros((1, D), jnp.float32),
            w_fc=scale * jax.random.normal(ks[2], (D, 4 * D), jnp.float32),
            b_fc=jnp.zeros((1, 4 * D), jnp.float32),
            w_proj=scale * jax.random.normal(ks[3], (4 * D, D), jnp.float32),
            b_proj=jnp.zeros((1, D), jnp.float32),
            prompt_tx=scale * jax.random.normal(ks[4], (4, 1, D), jnp.float32),
            prompt_tx_t=scale * jax.random.normal(ks[5], (4, 1, D), jnp.float32),
        ))
    return params


if __name__ == "__main__":
    key = jax.random.PRNGKey(0)
    N, B, D, H, LAYERS = 8, 2, 32, 4, 2       # seq, batch, width, heads, layers

    x = jax.random.normal(jax.random.fold_in(key, 123), (N, B, D), dtype=jnp.float32)
    params = init_params(key, D, LAYERS)
    # One-time weight prep (bf16 cast + q-scale folding) happens OUTSIDE the
    # jitted forward, so no per-layer in-graph converts.
    prepared = prepare_params(params, H)

    # TODO(synk): the PyTorch try/except attn_mask-size dispatch is baked into the
    # `except` path (prompted-length causal triu(1) mask); a matching-length
    # user-supplied mask is not modeled.
    fwd = jax.jit(functools.partial(transformer_text, n_head=H))
    out = jax.block_until_ready(fwd(x, prepared))
    assert out.shape == (N, B, D), out.shape
    assert bool(jnp.all(jnp.isfinite(out)))
    print("KERNEL_OK")
</pallas_src>

<mosaic_0001>
module attributes {stable_mosaic.version = 11 : i64} {
  func.func @block_kernel(%arg0: i32, %arg1: memref<1x8x32xf32, #tpu.memory_space<vmem>>, %arg2: memref<4x32xf32, #tpu.memory_space<vmem>>, %arg3: memref<1x32xf32, #tpu.memory_space<vmem>>, %arg4: memref<1x32xf32, #tpu.memory_space<vmem>>, %arg5: memref<32x96xbf16, #tpu.memory_space<vmem>>, %arg6: memref<1x96xf32, #tpu.memory_space<vmem>>, %arg7: memref<32x32xbf16, #tpu.memory_space<vmem>>, %arg8: memref<1x32xf32, #tpu.memory_space<vmem>>, %arg9: memref<1x32xf32, #tpu.memory_space<vmem>>, %arg10: memref<1x32xf32, #tpu.memory_space<vmem>>, %arg11: memref<32x128xbf16, #tpu.memory_space<vmem>>, %arg12: memref<1x128xf32, #tpu.memory_space<vmem>>, %arg13: memref<128x32xbf16, #tpu.memory_space<vmem>>, %arg14: memref<1x32xf32, #tpu.memory_space<vmem>>, %arg15: memref<1x8x32xf32, #tpu.memory_space<vmem>>) attributes {dimension_semantics = [#tpu.dimension_semantics<parallel>], iteration_bounds = array<i64: 2>, scalar_prefetch = 0 : i64, scratch_operands = 0 : i64, tpu.core_type = #tpu.core_type<tc>, window_params = [{transform_indices = @transform_0, window_bounds = array<i64: 1, 8, 32>}, {pipeline_mode = #tpu.pipeline_mode<synchronous>, transform_indices = @transform_1, window_bounds = array<i64: 4, 32>}, {pipeline_mode = #tpu.pipeline_mode<synchronous>, transform_indices = @transform_2, window_bounds = array<i64: 1, 32>}, {pipeline_mode = #tpu.pipeline_mode<synchronous>, transform_indices = @transform_3, window_bounds = array<i64: 1, 32>}, {pipeline_mode = #tpu.pipeline_mode<synchronous>, transform_indices = @transform_4, window_bounds = array<i64: 32, 96>}, {pipeline_mode = #tpu.pipeline_mode<synchronous>, transform_indices = @transform_5, window_bounds = array<i64: 1, 96>}, {pipeline_mode = #tpu.pipeline_mode<synchronous>, transform_indices = @transform_6, window_bounds = array<i64: 32, 32>}, {pipeline_mode = #tpu.pipeline_mode<synchronous>, transform_indices = @transform_7, window_bounds = array<i64: 1, 32>}, {pipeline_mode = #tpu.pipeline_mode<synchronous>, transform_indices = @transform_8, window_bounds = array<i64: 1, 32>}, {pipeline_mode = #tpu.pipeline_mode<synchronous>, transform_indices = @transform_9, window_bounds = array<i64: 1, 32>}, {pipeline_mode = #tpu.pipeline_mode<synchronous>, transform_indices = @transform_10, window_bounds = array<i64: 32, 128>}, {pipeline_mode = #tpu.pipeline_mode<synchronous>, transform_indices = @transform_11, window_bounds = array<i64: 1, 128>}, {pipeline_mode = #tpu.pipeline_mode<synchronous>, transform_indices = @transform_12, window_bounds = array<i64: 128, 32>}, {pipeline_mode = #tpu.pipeline_mode<synchronous>, transform_indices = @transform_13, window_bounds = array<i64: 1, 32>}, {transform_indices = @transform_14, window_bounds = array<i64: 1, 8, 32>}]} {
    %c0 = arith.constant 0 : index
    %c0_0 = arith.constant 0 : index
    %0 = vector.load %arg2[%c0, %c0_0] : memref<4x32xf32, #tpu.memory_space<vmem>>, vector<4x32xf32>
    %1 = vector.extract_strided_slice %0 {offsets = [0, 0], sizes = [2, 32], strides = [1, 1]} : vector<4x32xf32> to vector<2x32xf32>
    %2 = vector.shape_cast %1 : vector<2x32xf32> to vector<1x2x32xf32>
    %c0_1 = arith.constant 0 : index
    %c0_2 = arith.constant 0 : index
    %c0_3 = arith.constant 0 : index
    %3 = vector.load %arg1[%c0_1, %c0_2, %c0_3] : memref<1x8x32xf32, #tpu.memory_space<vmem>>, vector<1x8x32xf32>
    %4 = vector.extract_strided_slice %0 {offsets = [2, 0], sizes = [2, 32], strides = [1, 1]} : vector<4x32xf32> to vector<2x32xf32>
    %5 = vector.shape_cast %4 : vector<2x32xf32> to vector<1x2x32xf32>
    %cst = arith.constant 0.000000e+00 : f32
    %6 = vector.broadcast %cst : f32 to vector<1x4x32xf32>
    %7 = tpu.concatenate %2, %3, %5, %6 in 1 : vector<1x2x32xf32>, vector<1x8x32xf32>, vector<1x2x32xf32>, vector<1x4x32xf32> -> vector<1x16x32xf32>
    %8 = vector.shape_cast %7 : vector<1x16x32xf32> to vector<16x32xf32>
    %c0_4 = arith.constant 0 : index
    %c0_5 = arith.constant 0 : index
    %9 = vector.load %arg3[%c0_4, %c0_5] : memref<1x32xf32, #tpu.memory_space<vmem>>, vector<1x32xf32>
    %10 = vector.shape_cast %9 : vector<1x32xf32> to vector<32xf32>
    %c0_6 = arith.constant 0 : index
    %c0_7 = arith.constant 0 : index
    %11 = vector.load %arg4[%c0_6, %c0_7] : memref<1x32xf32, #tpu.memory_space<vmem>>, vector<1x32xf32>
    %12 = vector.shape_cast %11 : vector<1x32xf32> to vector<32xf32>
    %cst_8 = arith.constant dense<0.000000e+00> : vector<16xf32>
    %13 = vector.multi_reduction <add>, %8, %cst_8 [1] : vector<16x32xf32> to vector<16xf32>
    %14 = vector.shape_cast %13 : vector<16xf32> to vector<16x1xf32>
    %cst_9 = arith.constant 3.200000e+01 : f32
    %15 = vector.broadcast %cst_9 : f32 to vector<16x1xf32>
    %16 = arith.divf %14, %15 : vector<16x1xf32>
    %17 = vector.broadcast %16 : vector<16x1xf32> to vector<16x32xf32>
    %18 = arith.subf %8, %17 : vector<16x32xf32>
    %19 = arith.mulf %18, %18 : vector<16x32xf32>
    %cst_10 = arith.constant dense<0.000000e+00> : vector<16xf32>
    %20 = vector.multi_reduction <add>, %19, %cst_10 [1] : vector<16x32xf32> to vector<16xf32>
    %21 = vector.shape_cast %20 : vector<16xf32> to vector<16x1xf32>
    %cst_11 = arith.constant 3.200000e+01 : f32
    %22 = vector.broadcast %cst_11 : f32 to vector<16x1xf32>
    %23 = arith.divf %21, %22 : vector<16x1xf32>
    %cst_12 = arith.constant 9.99999974E-6 : f32
    %24 = vector.broadcast %cst_12 : f32 to vector<16x1xf32>
    %25 = arith.addf %23, %24 : vector<16x1xf32>
    %26 = math.rsqrt %25 : vector<16x1xf32>
    %27 = vector.broadcast %26 : vector<16x1xf32> to vector<16x32xf32>
    %28 = arith.mulf %18, %27 : vector<16x32xf32>
    %29 = vector.shape_cast %10 : vector<32xf32> to vector<1x32xf32>
    %30 = vector.broadcast %29 : vector<1x32xf32> to vector<16x32xf32>
    %31 = arith.mulf %28, %30 : vector<16x32xf32>
    %32 = vector.shape_cast %12 : vector<32xf32> to vector<1x32xf32>
    %33 = vector.broadcast %32 : vector<1x32xf32> to vector<16x32xf32>
    %34 = arith.addf %31, %33 : vector<16x32xf32>
    %35 = arith.truncf %34 : vector<16x32xf32> to vector<16x32xbf16>
    %c0_13 = arith.constant 0 : index
    %c0_14 = arith.constant 0 : index
    %36 = vector.load %arg5[%c0_13, %c0_14] : memref<32x96xbf16, #tpu.memory_space<vmem>>, vector<32x96xbf16>
    %cst_15 = arith.constant dense<0.000000e+00> : vector<16x96xf32>
    %37 = tpu.matmul %35, %36, %cst_15 {dimension_numbers = #tpu.dot_dimension_numbers<[1], [0], [0], [1], [0, 0, 1, 1], [], []>} : vector<16x32xbf16>, vector<32x96xbf16>, vector<16x96xf32> -> vector<16x96xf32>
    %c0_16 = arith.constant 0 : index
    %c0_17 = arith.constant 0 : index
    %38 = vector.load %arg6[%c0_16, %c0_17] : memref<1x96xf32, #tpu.memory_space<vmem>>, vector<1x96xf32>
    %39 = vector.shape_cast %38 : vector<1x96xf32> to vector<96xf32>
    %40 = vector.shape_cast %39 : vector<96xf32> to vector<1x96xf32>
    %41 = vector.broadcast %40 : vector<1x96xf32> to vector<16x96xf32>
    %42 = arith.addf %37, %41 : vector<16x96xf32>
    %43 = vector.extract_strided_slice %42 {offsets = [0, 0], sizes = [16, 32], strides = [1, 1]} : vector<16x96xf32> to vector<16x32xf32>
    %44 = vector.shape_cast %43 : vector<16x32xf32> to vector<1x16x32xf32>
    %45 = arith.truncf %44 : vector<1x16x32xf32> to vector<1x16x32xbf16>
    %46 = vector.extract_strided_slice %42 {offsets = [0, 32], sizes = [16, 32], strides = [1, 1]} : vector<16x96xf32> to vector<16x32xf32>
    %47 = vector.shape_cast %46 : vector<16x32xf32> to vector<1x16x32xf32>
    %48 = arith.truncf %47 : vector<1x16x32xf32> to vector<1x16x32xbf16>
    %49 = vector.extract_strided_slice %42 {offsets = [0, 64], sizes = [16, 32], strides = [1, 1]} : vector<16x96xf32> to vector<16x32xf32>
    %50 = vector.shape_cast %49 : vector<16x32xf32> to vector<1x16x32xf32>
    %51 = arith.truncf %50 : vector<1x16x32xf32> to vector<1x16x32xbf16>
    %52 = tpu.iota {dimensions = array<i32: 0>} : vector<16x16xi32>
    %53 = tpu.iota {dimensions = array<i32: 1>} : vector<16x16xi32>
    %54 = arith.cmpi sgt, %53, %52 : vector<16x16xi32>
    %cst_18 = arith.constant -1.000000e+30 : f32
    %cst_19 = arith.constant 0.000000e+00 : f32
    %55 = vector.broadcast %cst_18 : f32 to vector<16x16xf32>
    %56 = vector.broadcast %cst_19 : f32 to vector<16x16xf32>
    %57 = arith.select %54, %55, %56 : vector<16x16xi1>, vector<16x16xf32>
    %58 = vector.shape_cast %57 : vector<16x16xf32> to vector<1x16x16xf32>
    %59 = vector.extract_strided_slice %45 {offsets = [0, 0, 0], sizes = [1, 16, 8], strides = [1, 1, 1]} : vector<1x16x32xbf16> to vector<1x16x8xbf16>
    %60 = vector.extract_strided_slice %48 {offsets = [0, 0, 0], sizes = [1, 16, 8], strides = [1, 1, 1]} : vector<1x16x32xbf16> to vector<1x16x8xbf16>
    "tpu.trace_start"() <{level = 10 : i32, message = "bld,bmd->blm"}> : () -> ()
    %cst_20 = arith.constant dense<0.000000e+00> : vector<1x16x16xf32>
    %61 = tpu.matmul %59, %60, %cst_20 {dimension_numbers = #tpu.dot_dimension_numbers<[2], [2], [1], [1], [0, 0, 0, 1, 1, 1], [0], [0]>} : vector<1x16x8xbf16>, vector<1x16x8xbf16>, vector<1x16x16xf32> -> vector<1x16x16xf32>
    "tpu.trace_stop"() : () -> ()
    %62 = arith.addf %61, %58 : vector<1x16x16xf32>
    %cst_21 = arith.constant dense<0xFF800000> : vector<1x16xf32>
    %63 = vector.multi_reduction <maximumf>, %62, %cst_21 [2] : vector<1x16x16xf32> to vector<1x16xf32>
    %64 = vector.shape_cast %63 : vector<1x16xf32> to vector<1x16x1xf32>
    %65 = vector.broadcast %64 : vector<1x16x1xf32> to vector<1x16x16xf32>
    %66 = arith.subf %62, %65 : vector<1x16x16xf32>
    %67 = math.exp %66 : vector<1x16x16xf32>
    %cst_22 = arith.constant dense<0.000000e+00> : vector<1x16xf32>
    %68 = vector.multi_reduction <add>, %67, %cst_22 [2] : vector<1x16x16xf32> to vector<1x16xf32>
    %69 = vector.shape_cast %68 : vector<1x16xf32> to vector<1x16x1xf32>
    %cst_23 = arith.constant 1.000000e+00 : f32
    %70 = vector.broadcast %cst_23 : f32 to vector<1x16x1xf32>
    %71 = arith.divf %70, %69 : vector<1x16x1xf32>
    %72 = vector.broadcast %71 : vector<1x16x1xf32> to vector<1x16x16xf32>
    %73 = arith.mulf %67, %72 : vector<1x16x16xf32>
    %74 = arith.truncf %73 : vector<1x16x16xf32> to vector<1x16x16xbf16>
    %75 = vector.extract_strided_slice %51 {offsets = [0, 0, 0], sizes = [1, 16, 8], strides = [1, 1, 1]} : vector<1x16x32xbf16> to vector<1x16x8xbf16>
    "tpu.trace_start"() <{level = 10 : i32, message = "blm,bmd->bld"}> : () -> ()
    %cst_24 = arith.constant dense<0.000000e+00> : vector<1x16x8xf32>
    %76 = tpu.matmul %74, %75, %cst_24 {dimension_numbers = #tpu.dot_dimension_numbers<[2], [1], [1], [2], [0, 0, 0, 1, 1, 2], [0], [0]>} : vector<1x16x16xbf16>, vector<1x16x8xbf16>, vector<1x16x8xf32> -> vector<1x16x8xf32>
    "tpu.trace_stop"() : () -> ()
    %77 = vector.extract_strided_slice %45 {offsets = [0, 0, 8], sizes = [1, 16, 8], strides = [1, 1, 1]} : vector<1x16x32xbf16> to vector<1x16x8xbf16>
    %78 = vector.extract_strided_slice %48 {offsets = [0, 0, 8], sizes = [1, 16, 8], strides = [1, 1, 1]} : vector<1x16x32xbf16> to vector<1x16x8xbf16>
    "tpu.trace_start"() <{level = 10 : i32, message = "bld,bmd->blm"}> : () -> ()
    %cst_25 = arith.constant dense<0.000000e+00> : vector<1x16x16xf32>
    %79 = tpu.matmul %77, %78, %cst_25 {dimension_numbers = #tpu.dot_dimension_numbers<[2], [2], [1], [1], [0, 0, 0, 1, 1, 1], [0], [0]>} : vector<1x16x8xbf16>, vector<1x16x8xbf16>, vector<1x16x16xf32> -> vector<1x16x16xf32>
    "tpu.trace_stop"() : () -> ()
    %80 = arith.addf %79, %58 : vector<1x16x16xf32>
    %cst_26 = arith.constant dense<0xFF800000> : vector<1x16xf32>
    %81 = vector.multi_reduction <maximumf>, %80, %cst_26 [2] : vector<1x16x16xf32> to vector<1x16xf32>
    %82 = vector.shape_cast %81 : vector<1x16xf32> to vector<1x16x1xf32>
    %83 = vector.broadcast %82 : vector<1x16x1xf32> to vector<1x16x16xf32>
    %84 = arith.subf %80, %83 : vector<1x16x16xf32>
    %85 = math.exp %84 : vector<1x16x16xf32>
    %cst_27 = arith.constant dense<0.000000e+00> : vector<1x16xf32>
    %86 = vector.multi_reduction <add>, %85, %cst_27 [2] : vector<1x16x16xf32> to vector<1x16xf32>
    %87 = vector.shape_cast %86 : vector<1x16xf32> to vector<1x16x1xf32>
    %cst_28 = arith.constant 1.000000e+00 : f32
    %88 = vector.broadcast %cst_28 : f32 to vector<1x16x1xf32>
    %89 = arith.divf %88, %87 : vector<1x16x1xf32>
    %90 = vector.broadcast %89 : vector<1x16x1xf32> to vector<1x16x16xf32>
    %91 = arith.mulf %85, %90 : vector<1x16x16xf32>
    %92 = arith.truncf %91 : vector<1x16x16xf32> to vector<1x16x16xbf16>
    %93 = vector.extract_strided_slice %51 {offsets = [0, 0, 8], sizes = [1, 16, 8], strides = [1, 1, 1]} : vector<1x16x32xbf16> to vector<1x16x8xbf16>
    "tpu.trace_start"() <{level = 10 : i32, message = "blm,bmd->bld"}> : () -> ()
    %cst_29 = arith.constant dense<0.000000e+00> : vector<1x16x8xf32>
    %94 = tpu.matmul %92, %93, %cst_29 {dimension_numbers = #tpu.dot_dimension_numbers<[2], [1], [1], [2], [0, 0, 0, 1, 1, 2], [0], [0]>} : vector<1x16x16xbf16>, vector<1x16x8xbf16>, vector<1x16x8xf32> -> vector<1x16x8xf32>
    "tpu.trace_stop"() : () -> ()
    %95 = vector.extract_strided_slice %45 {offsets = [0, 0, 16], sizes = [1, 16, 8], strides = [1, 1, 1]} : vector<1x16x32xbf16> to vector<1x16x8xbf16>
    %96 = vector.extract_strided_slice %48 {offsets = [0, 0, 16], sizes = [1, 16, 8], strides = [1, 1, 1]} : vector<1x16x32xbf16> to vector<1x16x8xbf16>
    "tpu.trace_start"() <{level = 10 : i32, message = "bld,bmd->blm"}> : () -> ()
    %cst_30 = arith.constant dense<0.000000e+00> : vector<1x16x16xf32>
    %97 = tpu.matmul %95, %96, %cst_30 {dimension_numbers = #tpu.dot_dimension_numbers<[2], [2], [1], [1], [0, 0, 0, 1, 1, 1], [0], [0]>} : vector<1x16x8xbf16>, vector<1x16x8xbf16>, vector<1x16x16xf32> -> vector<1x16x16xf32>
    "tpu.trace_stop"() : () -> ()
    %98 = arith.addf %97, %58 : vector<1x16x16xf32>
    %cst_31 = arith.constant dense<0xFF800000> : vector<1x16xf32>
    %99 = vector.multi_reduction <maximumf>, %98, %cst_31 [2] : vector<1x16x16xf32> to vector<1x16xf32>
    %100 = vector.shape_cast %99 : vector<1x16xf32> to vector<1x16x1xf32>
    %101 = vector.broadcast %100 : vector<1x16x1xf32> to vector<1x16x16xf32>
    %102 = arith.subf %98, %101 : vector<1x16x16xf32>
    %103 = math.exp %102 : vector<1x16x16xf32>
    %cst_32 = arith.constant dense<0.000000e+00> : vector<1x16xf32>
    %104 = vector.multi_reduction <add>, %103, %cst_32 [2] : vector<1x16x16xf32> to vector<1x16xf32>
    %105 = vector.shape_cast %104 : vector<1x16xf32> to vector<1x16x1xf32>
    %cst_33 = arith.constant 1.000000e+00 : f32
    %106 = vector.broadcast %cst_33 : f32 to vector<1x16x1xf32>
    %107 = arith.divf %106, %105 : vector<1x16x1xf32>
    %108 = vector.broadcast %107 : vector<1x16x1xf32> to vector<1x16x16xf32>
    %109 = arith.mulf %103, %108 : vector<1x16x16xf32>
    %110 = arith.truncf %109 : vector<1x16x16xf32> to vector<1x16x16xbf16>
    %111 = vector.extract_strided_slice %51 {offsets = [0, 0, 16], sizes = [1, 16, 8], strides = [1, 1, 1]} : vector<1x16x32xbf16> to vector<1x16x8xbf16>
    "tpu.trace_start"() <{level = 10 : i32, message = "blm,bmd->bld"}> : () -> ()
    %cst_34 = arith.constant dense<0.000000e+00> : vector<1x16x8xf32>
    %112 = tpu.matmul %110, %111, %cst_34 {dimension_numbers = #tpu.dot_dimension_numbers<[2], [1], [1], [2], [0, 0, 0, 1, 1, 2], [0], [0]>} : vector<1x16x16xbf16>, vector<1x16x8xbf16>, vector<1x16x8xf32> -> vector<1x16x8xf32>
    "tpu.trace_stop"() : () -> ()
    %113 = vector.extract_strided_slice %45 {offsets = [0, 0, 24], sizes = [1, 16, 8], strides = [1, 1, 1]} : vector<1x16x32xbf16> to vector<1x16x8xbf16>
    %114 = vector.extract_strided_slice %48 {offsets = [0, 0, 24], sizes = [1, 16, 8], strides = [1, 1, 1]} : vector<1x16x32xbf16> to vector<1x16x8xbf16>
    "tpu.trace_start"() <{level = 10 : i32, message = "bld,bmd->blm"}> : () -> ()
    %cst_35 = arith.constant dense<0.000000e+00> : vector<1x16x16xf32>
    %115 = tpu.matmul %113, %114, %cst_35 {dimension_numbers = #tpu.dot_dimension_numbers<[2], [2], [1], [1], [0, 0, 0, 1, 1, 1], [0], [0]>} : vector<1x16x8xbf16>, vector<1x16x8xbf16>, vector<1x16x16xf32> -> vector<1x16x16xf32>
    "tpu.trace_stop"() : () -> ()
    %116 = arith.addf %115, %58 : vector<1x16x16xf32>
    %cst_36 = arith.constant dense<0xFF800000> : vector<1x16xf32>
    %117 = vector.multi_reduction <maximumf>, %116, %cst_36 [2] : vector<1x16x16xf32> to vector<1x16xf32>
    %118 = vector.shape_cast %117 : vector<1x16xf32> to vector<1x16x1xf32>
    %119 = vector.broadcast %118 : vector<1x16x1xf32> to vector<1x16x16xf32>
    %120 = arith.subf %116, %119 : vector<1x16x16xf32>
    %121 = math.exp %120 : vector<1x16x16xf32>
    %cst_37 = arith.constant dense<0.000000e+00> : vector<1x16xf32>
    %122 = vector.multi_reduction <add>, %121, %cst_37 [2] : vector<1x16x16xf32> to vector<1x16xf32>
    %123 = vector.shape_cast %122 : vector<1x16xf32> to vector<1x16x1xf32>
    %cst_38 = arith.constant 1.000000e+00 : f32
    %124 = vector.broadcast %cst_38 : f32 to vector<1x16x1xf32>
    %125 = arith.divf %124, %123 : vector<1x16x1xf32>
    %126 = vector.broadcast %125 : vector<1x16x1xf32> to vector<1x16x16xf32>
    %127 = arith.mulf %121, %126 : vector<1x16x16xf32>
    %128 = arith.truncf %127 : vector<1x16x16xf32> to vector<1x16x16xbf16>
    %129 = vector.extract_strided_slice %51 {offsets = [0, 0, 24], sizes = [1, 16, 8], strides = [1, 1, 1]} : vector<1x16x32xbf16> to vector<1x16x8xbf16>
    "tpu.trace_start"() <{level = 10 : i32, message = "blm,bmd->bld"}> : () -> ()
    %cst_39 = arith.constant dense<0.000000e+00> : vector<1x16x8xf32>
    %130 = tpu.matmul %128, %129, %cst_39 {dimension_numbers = #tpu.dot_dimension_numbers<[2], [1], [1], [2], [0, 0, 0, 1, 1, 2], [0], [0]>} : vector<1x16x16xbf16>, vector<1x16x8xbf16>, vector<1x16x8xf32> -> vector<1x16x8xf32>
    "tpu.trace_stop"() : () -> ()
    %131 = tpu.concatenate %76, %94, %112, %130 in 2 : vector<1x16x8xf32>, vector<1x16x8xf32>, vector<1x16x8xf32>, vector<1x16x8xf32> -> vector<1x16x32xf32>
    %132 = vector.shape_cast %131 : vector<1x16x32xf32> to vector<16x32xf32>
    %133 = arith.truncf %132 : vector<16x32xf32> to vector<16x32xbf16>
    %c0_40 = arith.constant 0 : index
    %c0_41 = arith.constant 0 : index
    %134 = vector.load %arg7[%c0_40, %c0_41] : memref<32x32xbf16, #tpu.memory_space<vmem>>, vector<32x32xbf16>
    %cst_42 = arith.constant dense<0.000000e+00> : vector<16x32xf32>
    %135 = tpu.matmul %133, %134, %cst_42 {dimension_numbers = #tpu.dot_dimension_numbers<[1], [0], [0], [1], [0, 0, 1, 1], [], []>} : vector<16x32xbf16>, vector<32x32xbf16>, vector<16x32xf32> -> vector<16x32xf32>
    %c0_43 = arith.constant 0 : index
    %c0_44 = arith.constant 0 : index
    %136 = vector.load %arg8[%c0_43, %c0_44] : memref<1x32xf32, #tpu.memory_space<vmem>>, vector<1x32xf32>
    %137 = vector.shape_cast %136 : vector<1x32xf32> to vector<32xf32>
    %138 = vector.shape_cast %137 : vector<32xf32> to vector<1x32xf32>
    %139 = vector.broadcast %138 : vector<1x32xf32> to vector<16x32xf32>
    %140 = arith.addf %135, %139 : vector<16x32xf32>
    %141 = arith.addf %8, %140 : vector<16x32xf32>
    %c0_45 = arith.constant 0 : index
    %c0_46 = arith.constant 0 : index
    %142 = vector.load %arg9[%c0_45, %c0_46] : memref<1x32xf32, #tpu.memory_space<vmem>>, vector<1x32xf32>
    %143 = vector.shape_cast %142 : vector<1x32xf32> to vector<32xf32>
    %c0_47 = arith.constant 0 : index
    %c0_48 = arith.constant 0 : index
    %144 = vector.load %arg10[%c0_47, %c0_48] : memref<1x32xf32, #tpu.memory_space<vmem>>, vector<1x32xf32>
    %145 = vector.shape_cast %144 : vector<1x32xf32> to vector<32xf32>
    %cst_49 = arith.constant dense<0.000000e+00> : vector<16xf32>
    %146 = vector.multi_reduction <add>, %141, %cst_49 [1] : vector<16x32xf32> to vector<16xf32>
    %147 = vector.shape_cast %146 : vector<16xf32> to vector<16x1xf32>
    %cst_50 = arith.constant 3.200000e+01 : f32
    %148 = vector.broadcast %cst_50 : f32 to vector<16x1xf32>
    %149 = arith.divf %147, %148 : vector<16x1xf32>
    %150 = vector.broadcast %149 : vector<16x1xf32> to vector<16x32xf32>
    %151 = arith.subf %141, %150 : vector<16x32xf32>
    %152 = arith.mulf %151, %151 : vector<16x32xf32>
    %cst_51 = arith.constant dense<0.000000e+00> : vector<16xf32>
    %153 = vector.multi_reduction <add>, %152, %cst_51 [1] : vector<16x32xf32> to vector<16xf32>
    %154 = vector.shape_cast %153 : vector<16xf32> to vector<16x1xf32>
    %cst_52 = arith.constant 3.200000e+01 : f32
    %155 = vector.broadcast %cst_52 : f32 to vector<16x1xf32>
    %156 = arith.divf %154, %155 : vector<16x1xf32>
    %cst_53 = arith.constant 9.99999974E-6 : f32
    %157 = vector.broadcast %cst_53 : f32 to vector<16x1xf32>
    %158 = arith.addf %156, %157 : vector<16x1xf32>
    %159 = math.rsqrt %158 : vector<16x1xf32>
    %160 = vector.broadcast %159 : vector<16x1xf32> to vector<16x32xf32>
    %161 = arith.mulf %151, %160 : vector<16x32xf32>
    %162 = vector.shape_cast %143 : vector<32xf32> to vector<1x32xf32>
    %163 = vector.broadcast %162 : vector<1x32xf32> to vector<16x32xf32>
    %164 = arith.mulf %161, %163 : vector<16x32xf32>
    %165 = vector.shape_cast %145 : vector<32xf32> to vector<1x32xf32>
    %166 = vector.broadcast %165 : vector<1x32xf32> to vector<16x32xf32>
    %167 = arith.addf %164, %166 : vector<16x32xf32>
    %168 = arith.truncf %167 : vector<16x32xf32> to vector<16x32xbf16>
    %c0_54 = arith.constant 0 : index
    %c0_55 = arith.constant 0 : index
    %169 = vector.load %arg11[%c0_54, %c0_55] : memref<32x128xbf16, #tpu.memory_space<vmem>>, vector<32x128xbf16>
    %cst_56 = arith.constant dense<0.000000e+00> : vector<16x128xf32>
    %170 = tpu.matmul %168, %169, %cst_56 {dimension_numbers = #tpu.dot_dimension_numbers<[1], [0], [0], [1], [0, 0, 1, 1], [], []>} : vector<16x32xbf16>, vector<32x128xbf16>, vector<16x128xf32> -> vector<16x128xf32>
    %c0_57 = arith.constant 0 : index
    %c0_58 = arith.constant 0 : index
    %171 = vector.load %arg12[%c0_57, %c0_58] : memref<1x128xf32, #tpu.memory_space<vmem>>, vector<1x128xf32>
    %172 = vector.shape_cast %171 : vector<1x128xf32> to vector<128xf32>
    %173 = vector.shape_cast %172 : vector<128xf32> to vector<1x128xf32>
    %174 = vector.broadcast %173 : vector<1x128xf32> to vector<16x128xf32>
    %175 = arith.addf %170, %174 : vector<16x128xf32>
    %cst_59 = arith.constant 8.510000e-01 : f32
    %176 = vector.broadcast %cst_59 : f32 to vector<16x128xf32>
    %177 = arith.mulf %176, %175 : vector<16x128xf32>
    %178 = math.tanh %177 : vector<16x128xf32>
    %cst_60 = arith.constant 1.000000e+00 : f32
    %179 = vector.broadcast %cst_60 : f32 to vector<16x128xf32>
    %180 = arith.addf %179, %178 : vector<16x128xf32>
    %cst_61 = arith.constant 5.000000e-01 : f32
    %181 = vector.broadcast %cst_61 : f32 to vector<16x128xf32>
    %182 = arith.mulf %181, %180 : vector<16x128xf32>
    %183 = arith.mulf %175, %182 : vector<16x128xf32>
    %184 = arith.truncf %183 : vector<16x128xf32> to vector<16x128xbf16>
    %c0_62 = arith.constant 0 : index
    %c0_63 = arith.constant 0 : index
    %185 = vector.load %arg13[%c0_62, %c0_63] : memref<128x32xbf16, #tpu.memory_space<vmem>>, vector<128x32xbf16>
    %cst_64 = arith.constant dense<0.000000e+00> : vector<16x32xf32>
    %186 = tpu.matmul %184, %185, %cst_64 {dimension_numbers = #tpu.dot_dimension_numbers<[1], [0], [0], [1], [0, 0, 1, 1], [], []>} : vector<16x128xbf16>, vector<128x32xbf16>, vector<16x32xf32> -> vector<16x32xf32>
    %c0_65 = arith.constant 0 : index
    %c0_66 = arith.constant 0 : index
    %187 = vector.load %arg14[%c0_65, %c0_66] : memref<1x32xf32, #tpu.memory_space<vmem>>, vector<1x32xf32>
    %188 = vector.shape_cast %187 : vector<1x32xf32> to vector<32xf32>
    %189 = vector.shape_cast %188 : vector<32xf32> to vector<1x32xf32>
    %190 = vector.broadcast %189 : vector<1x32xf32> to vector<16x32xf32>
    %191 = arith.addf %186, %190 : vector<16x32xf32>
    %192 = arith.addf %141, %191 : vector<16x32xf32>
    %193 = vector.shape_cast %192 : vector<16x32xf32> to vector<1x16x32xf32>
    %194 = vector.extract_strided_slice %193 {offsets = [0, 2, 0], sizes = [1, 8, 32], strides = [1, 1, 1]} : vector<1x16x32xf32> to vector<1x8x32xf32>
    %c0_67 = arith.constant 0 : index
    %c0_68 = arith.constant 0 : index
    %c0_69 = arith.constant 0 : index
    %195 = vector.load %arg15[%c0_67, %c0_68, %c0_69] : memref<1x8x32xf32, #tpu.memory_space<vmem>>, vector<1x8x32xf32>
    tpu.vector_store %arg15[%c0_67, %c0_68, %c0_69], %194 {strides = array<i32>} : memref<1x8x32xf32, #tpu.memory_space<vmem>>, vector<1x8x32xf32>,
    return
  }
  func.func @transform_0(%arg0: i32) -> (i32, i32, i32) {
    %c0_i32 = arith.constant 0 : i32
    %c0_i32_0 = arith.constant 0 : i32
    %c0_i32_1 = arith.constant 0 : i32
    return %arg0, %c0_i32, %c0_i32_0 : i32, i32, i32
  }
  func.func @transform_1(%arg0: i32) -> (i32, i32) {
    %c0_i32 = arith.constant 0 : i32
    %c0_i32_0 = arith.constant 0 : i32
    %c0_i32_1 = arith.constant 0 : i32
    return %c0_i32, %c0_i32_0 : i32, i32
  }
  func.func @transform_2(%arg0: i32) -> (i32, i32) {
    %c0_i32 = arith.constant 0 : i32
    %c0_i32_0 = arith.constant 0 : i32
    %c0_i32_1 = arith.constant 0 : i32
    return %c0_i32, %c0_i32_0 : i32, i32
  }
  func.func @transform_3(%arg0: i32) -> (i32, i32) {
    %c0_i32 = arith.constant 0 : i32
    %c0_i32_0 = arith.constant 0 : i32
    %c0_i32_1 = arith.constant 0 : i32
    return %c0_i32, %c0_i32_0 : i32, i32
  }
  func.func @transform_4(%arg0: i32) -> (i32, i32) {
    %c0_i32 = arith.constant 0 : i32
    %c0_i32_0 = arith.constant 0 : i32
    %c0_i32_1 = arith.constant 0 : i32
    return %c0_i32, %c0_i32_0 : i32, i32
  }
  func.func @transform_5(%arg0: i32) -> (i32, i32) {
    %c0_i32 = arith.constant 0 : i32
    %c0_i32_0 = arith.constant 0 : i32
    %c0_i32_1 = arith.constant 0 : i32
    return %c0_i32, %c0_i32_0 : i32, i32
  }
  func.func @transform_6(%arg0: i32) -> (i32, i32) {
    %c0_i32 = arith.constant 0 : i32
    %c0_i32_0 = arith.constant 0 : i32
    %c0_i32_1 = arith.constant 0 : i32
    return %c0_i32, %c0_i32_0 : i32, i32
  }
  func.func @transform_7(%arg0: i32) -> (i32, i32) {
    %c0_i32 = arith.constant 0 : i32
    %c0_i32_0 = arith.constant 0 : i32
    %c0_i32_1 = arith.constant 0 : i32
    return %c0_i32, %c0_i32_0 : i32, i32
  }
  func.func @transform_8(%arg0: i32) -> (i32, i32) {
    %c0_i32 = arith.constant 0 : i32
    %c0_i32_0 = arith.constant 0 : i32
    %c0_i32_1 = arith.constant 0 : i32
    return %c0_i32, %c0_i32_0 : i32, i32
  }
  func.func @transform_9(%arg0: i32) -> (i32, i32) {
    %c0_i32 = arith.constant 0 : i32
    %c0_i32_0 = arith.constant 0 : i32
    %c0_i32_1 = arith.constant 0 : i32
    return %c0_i32, %c0_i32_0 : i32, i32
  }
  func.func @transform_10(%arg0: i32) -> (i32, i32) {
    %c0_i32 = arith.constant 0 : i32
    %c0_i32_0 = arith.constant 0 : i32
    %c0_i32_1 = arith.constant 0 : i32
    return %c0_i32, %c0_i32_0 : i32, i32
  }
  func.func @transform_11(%arg0: i32) -> (i32, i32) {
    %c0_i32 = arith.constant 0 : i32
    %c0_i32_0 = arith.constant 0 : i32
    %c0_i32_1 = arith.constant 0 : i32
    return %c0_i32, %c0_i32_0 : i32, i32
  }
  func.func @transform_12(%arg0: i32) -> (i32, i32) {
    %c0_i32 = arith.constant 0 : i32
    %c0_i32_0 = arith.constant 0 : i32
    %c0_i32_1 = arith.constant 0 : i32
    return %c0_i32, %c0_i32_0 : i32, i32
  }
  func.func @transform_13(%arg0: i32) -> (i32, i32) {
    %c0_i32 = arith.constant 0 : i32
    %c0_i32_0 = arith.constant 0 : i32
    %c0_i32_1 = arith.constant 0 : i32
    return %c0_i32, %c0_i32_0 : i32, i32
  }
  func.func @transform_14(%arg0: i32) -> (i32, i32, i32) {
    %c0_i32 = arith.constant 0 : i32
    %c0_i32_0 = arith.constant 0 : i32
    %c0_i32_1 = arith.constant 0 : i32
    return %arg0, %c0_i32, %c0_i32_0 : i32, i32, i32
  }
}

</mosaic_0001>

<bundles_post_ra>
// kernel: transformer_text.2
= control target key start
LH: loop header
LB: loop body
LE: loop exit
PB: predicated region body
PF: predicated region fallthrough
CT: control target
= control target key end

     0   :  { %s1850_s29 = smov 0   ;;  %s2068_s0 = inlined_call_operand.vmem [shape: f32[2,8,32], index: 0, kind: input, shape index: {}]   ;;  %s2069_s1 = inlined_call_operand.vmem [shape: f32[4,32], index: 1, kind: input, shape index: {}]   ;;  %s2070_s2 = inlined_call_operand.vmem [shape: f32[1,32], index: 2, kind: input, shape index: {}]   ;;  %s2071_s3 = inlined_call_operand.vmem [shape: f32[1,32], index: 3, kind: input, shape index: {}]   ;;  %s2072_s4 = inlined_call_operand.vmem [shape: bf16[32,96], index: 4, kind: input, shape index: {}]   ;;  %s2073_s5 = inlined_call_operand.vmem [shape: f32[1,96], index: 5, kind: input, shape index: {}]   ;;  %s2074_s6 = inlined_call_operand.vmem [shape: bf16[32,32], index: 6, kind: input, shape index: {}]   ;;  %s2075_s7 = inlined_call_operand.vmem [shape: f32[1,32], index: 7, kind: input, shape index: {}]   ;;  %s2076_s8 = inlined_call_operand.vmem [shape: f32[1,32], index: 8, kind: input, shape index: {}]   ;;  %s2077_s9 = inlined_call_operand.vmem [shape: f32[1,32], index: 9, kind: input, shape index: {}]   ;;  %s2078_s10 = inlined_call_operand.vmem [shape: bf16[32,128], index: 10, kind: input, shape index: {}]   ;;  %s2079_s11 = inlined_call_operand.vmem [shape: f32[1,128], index: 11, kind: input, shape index: {}]   ;;  %s2080_s12 = inlined_call_operand.vmem [shape: bf16[128,32], index: 12, kind: input, shape index: {}]   ;;  %s2081_s13 = inlined_call_operand.vmem [shape: f32[1,32], index: 13, kind: input, shape index: {}]   ;;  %s2082_s14 = inlined_call_operand.vmem [shape: f32[2,8,32], index: 14, kind: output, shape index: {}]  }
   0x1 LB: > { %s1486_s30 = sadd.s32 4294967295, %s1757_s29   ;;  %p1490_p0 = scmp.ge.s32.totalorder %s1757_s29, 1  ;;  %s1757_s29 = sphi %s1850_s29, %s24_s29  }
   0x2   : > { %p411_p1 = scmp.lt.s32.totalorder %s1757_s29, 3 }
   0x4   : > { %p412_p2 = pnand %p1490_p0, %p411_p1 }
   0x5   : > { %p455_p3 = scmp.lt.s32.totalorder (!%p412_p2), %s1486_s30, 1  ;;  %v464_v0 = vld [vmem:[%s2069_s1] sm:$0xf] (!%p412_p2)  ;;  %vm469_vm0 = vcmask (!%p412_p2), 1041408   ;;  %vm476_vm1 = vcmask (!%p412_p2), 261120   ;;  %vm472_vm2 = vcmask (!%p412_p2), 1043456   ;;  %v589_v57 = vlaneseq (!%p412_p2) }
   0x6   : > { %415 = sbr.rel (%p412_p2) target bundleno = 2563 (0xa03), region = 76  ;;  %v1693_v18 = vld [vmem:[%s2072_s4] sm:$0xff] (!%p412_p2)   ;;  %v1759_v19 = vmov (!%p412_p2), 0.0   ;;  %v1694_v20 = vld [vmem:[%s2072_s4 + $0x8] sm:$0xff] (!%p412_p2)   ;;  %vm1760_vm3 = vmmov (!%p412_p2), 0   ;;  %s1761_s18 = smov (!%p412_p2), 88  }
   0x7   : > { %1562 = vmatprep.subr.bf16.mxu0 (!%p412_p2), %v1759_v19  ;;  %1582 = vmatprep.subr.bf16.mxu1 (!%p412_p2), %v1759_v19  ;;  %v1493_v29 = vld [vmem:[%s2070_s2] ss:$0 sm:$0xff] (!%p412_p2)  ;;  %s1762_s19 = smov (!%p412_p2), 96   ;;  %s1764_s21 = smov (!%p412_p2), 112   ;;  %vm601_vm4 = vcmask (!%p412_p2), 64512   ;;  %v590_v58 = vshrl.u32 (!%p412_p2), %v589_v57, 7 }
   0x8   : > { %1563 = vmatpush3.bf16.msra.mxu0 (!%p412_p2), %v1693_v18  ;;  %1566 = vmatprep.mubr.msk.bf16.mxu0 (!%p412_p2), %vm1760_vm3, %v1759_v19  ;;  %v1494_v33 = vld [vmem:[%s2071_s3] ss:$0 sm:$0xff] (!%p412_p2)  ;;  %s1765_s22 = smov (!%p412_p2), 80   ;;  %s1766_s23 = smov (!%p412_p2), 104   ;;  %v593_v59 = vand.u32 (!%p412_p2), 127, %v589_v57  ;;  %vm649_vm7 = vcmask (!%p412_p2), 130048  }
   0x9   : > { %1564 = vmatprep.subr.bf16.mxu0 (!%p412_p2), %v1759_v19  ;;  %1584 = vmatprep.mubr.msk.bf16.mxu1 (!%p412_p2), %vm1760_vm3, %v1759_v19  ;;  %v1495_v38 = vld [vmem:[%s2073_s5] ss:$0 sm:$0xff] (!%p412_p2)  ;;  %s1767_s24 = smov (!%p412_p2), 72   ;;  %v591_v60 = vadd.s32 (!%p412_p2), 8, %v590_v58  ;;  %s1768_s25 = smov (!%p412_p2), 64   ;;  %vm1119_vm8 = vcmask (!%p412_p2), 195584  }
   0xa   : > { %vm594_vm5 = vcmp.gt.s32.totalorder (!%p412_p2), %v593_v59, %v590_v58  ;;  %s1769_s26 = smov (!%p412_p2), 48   ;;  %s1770_s27 = smov (!%p412_p2), 40   ;;  %vm1429_vm9 = vcmask (!%p412_p2), 261122   ;;  %vm1431_vm10 = vcmask (!%p412_p2), 254976  }
   0xb   : > { %vm595_vm6 = vcmp.gt.s32.totalorder (!%p412_p2), %v593_v59, %v591_v60  ;;  %v596_v61 = vsel (!%p412_p2), %vm594_vm5, -1e+30, %v1759_v19  ;;  %s1771_s28 = smov (!%p412_p2), 56  }
   0xc   : > { %1565 = vmatpush3.bf16.msra.mxu0 (!%p412_p2), %v1694_v20 }
   0xd   : > { %s2084_s30 = smov (!%p455_p3, %s1486_s30), 1  ;;  %1570 = vmatprep.subr.bf16.mxu0 %v1759_v19 }
   0xe   : > { %s1491_s15 = sshll.u32 %s2084_s30, 3 }
   0xf   : > { %s458_s20 = scalar_lea.vmem %s2068_s0, %s1491_s15  ;;  %s462_s16 = scalar_lea.vmem %s2082_s14, %s1491_s15 }
  0x10   : > { %v465_v1 = vld [vmem:[%s458_s20] sm:$0xff]  ;;  %s1763_s20 = smov 120  }
  0x11   : > { %v467_v2 = vrot.slane %v465_v1, 6 }
  0x13   : > { %v1869_v3 = vsel %vm469_vm0, %v464_v0, %v467_v2  ;;  %v471_v4 = vsel %vm469_vm0, %v467_v2, %v464_v0  ;;  %v597_v0 = vsel %vm595_vm6, -1e+30, %v1759_v19 }
  0x14   : > { %v477_v5 = vsel %vm476_vm1, %v1869_v3, 0.0  ;;  %v1873_v6 = vsel %vm472_vm2, %v471_v4, 0.0 }
  0x15   : > { %478 = vadd.xlane.f32.xlu0 %v477_v5  ;;  %v480_v7 = vsel %vm476_vm1, %v1873_v6, 0.0 }
  0x19   : > { %481 = vadd.xlane.f32.xlu0 %v480_v7 }
  0xa2   : > { %v479_v8 = vpop.xlane.xlu0 %478 }
  0xa3   : > { %v484_v9 = vmul.f32 0.03125, %v479_v8 }
  0xa5   : > { %v486_v10 = vsub.f32 %v1869_v3, %v484_v9 }
  0xa6   : > { %v482_v11 = vpop.xlane.xlu0 %481 }
  0xa7   : > { %v485_v12 = vmul.f32 0.03125, %v482_v11  ;;  %v488_v13 = vmul.f32 %v486_v10, %v486_v10 }
  0xa9   : > { %v487_v14 = vsub.f32 %v1873_v6, %v485_v12  ;;  %v490_v15 = vsel %vm476_vm1, %v488_v13, 0.0 }
  0xaa   : > { %491 = vadd.xlane.f32.xlu1 %v490_v15 }
  0xab   : > { %v489_v16 = vmul.f32 %v487_v14, %v487_v14 }
  0xad   : > { %v493_v17 = vsel %vm476_vm1, %v489_v16, 0.0 }
  0xae   : > { %494 = vadd.xlane.f32.xlu1 %v493_v17 }
 0x137   : > { %v492_v21 = vpop.xlane.xlu1 %491 }
 0x138   : > { %v496_v22 = vmul.f32 0.03125, %v492_v21 }
 0x13a   : > { %v498_v23 = vadd.f32 1e-05, %v496_v22 }
 0x13b   : > { %v495_v24 = vpop.xlane.xlu1 %494 }
 0x13c   : > { %1707 = vrsqrt.f32 %v498_v23  ;;  %v497_v25 = vmul.f32 0.03125, %v495_v24 }
 0x13e   : > { %v499_v26 = vadd.f32 1e-05, %v497_v25 }
 0x140   : > { %1709 = vrsqrt.f32 %v499_v26 }
 0x146   : > { %v1708_v27 = vpop.eup %1707 }
 0x147   : > { %v502_v28 = vmul.f32 %v1708_v27, %v486_v10 }
 0x149   : > { %v510_v32 = vmul.f32 %v1493_v29, %v502_v28 }
 0x14a   : > { %v1710_v30 = vpop.eup %1709 }
 0x14b   : > { %v503_v31 = vmul.f32 %v1710_v30, %v487_v14  ;;  %v518_v35 = vadd.f32 %v1494_v33, %v510_v32 }
 0x14d   : > { %v511_v34 = vmul.f32 %v1493_v29, %v503_v31 }
 0x14f   : > { %v519_v36 = vadd.f32 %v1494_v33, %v511_v34 }
 0x151   : > { %v520_v37 = vpack.c.bf16 %v519_v36, %v518_v35 }
 0x153   : > { %1567 = vmatmul.mubr.msk.bf16.vlgmr.msra.gmra.mrb[0].mxu0 %vm476_vm1, %v520_v37 }
 0x154   : > { %1572 = vmatprep.mubr.msk.bf16.mxu0 %vm1760_vm3, %v1759_v19 }
 0x226   : > { %v581_v39 = vpop.f32.mrb[0].mxu0 }
 0x227   : > { %v1568_v40 = vpop.f32.mrb[1].mxu0  ;;  %v582_v42 = vadd.f32 %v1495_v38, %v581_v39 }
 0x228   : > { %v584_v41 = vpop.f32.mrb[2].mxu0 }
 0x229   : > { %v585_v43 = vadd.f32 %v1495_v38, %v584_v41  ;;  %v1569_v44 = vpop.f32.mrb[3].mxu0 }
 0x22b   : > { %v1907_v45 = vpack.c.bf16 %v585_v43, %v582_v42 }
 0x22d   : > { %724 = vrot.lane.b32.xlu1 %v1907_v45, %s1761_s18  ;;  %599 = vrot.lane.b32.xlu0 %v1907_v45, %s1762_s19  ;;  %s1772_s18 = smov 8  }
 0x231   : > { %722 = vrot.lane.b32.xlu1 %v1907_v45, %s1763_s20  ;;  %845 = vrot.lane.b32.xlu0 %v1907_v45, %s1764_s21  ;;  %s1773_s21 = smov 16  }
 0x235   : > { %847 = vrot.lane.b32.xlu1 %v1907_v45, %s1765_s22  ;;  %968 = vrot.lane.b32.xlu0 %v1907_v45, %s1766_s23  ;;  %s1774_s22 = smov 24  }
 0x239   : > { %970 = vrot.lane.b32.xlu1 %v1907_v45, %s1767_s24 }
 0x29f   : > { %v725_v46 = vpop.permute.xlu1 %724  ;;  %v600_v47 = vpop.permute.xlu0 %599 }
 0x2a0   : > { %v606_v48 = vsel %vm601_vm4, %v600_v47, 0  ;;  %v730_v49 = vsel %vm601_vm4, %v725_v46, 0 }
 0x2a1   : > { %1571 = vmatpush3.bf16.xpose.msra.mxu0 %v606_v48  ;;  %1583 = vmatpush3.bf16.xpose.msra.mxu1 %v730_v49 }
 0x2a2   : > { %1594 = vmatprep.subr.bf16.mxu1 %v1759_v19  ;;  %1576 = vmatprep.subr.bf16.mxu0 %v1759_v19 }
 0x2a3   : > { %v723_v50 = vpop.permute.xlu1 %722  ;;  %v846_v54 = vpop.permute.xlu0 %845 }
 0x2a7   : > { %v848_v51 = vpop.permute.xlu1 %847  ;;  %v969_v56 = vpop.permute.xlu0 %968 }
 0x2a8   : > { %v853_v52 = vsel %vm601_vm4, %v848_v51, 0  ;;  %1573 = vmatmul.mubr.msk.bf16.vlgmr.msra.gmra.mrb[4].mxu0 %vm601_vm4, %v1907_v45  ;;  %1585 = vmatmul.mubr.msk.bf16.vlgmr.msra.gmra.mrb[0].mxu1 %vm601_vm4, %v723_v50 }
 0x2a9   : > { %1595 = vmatpush3.bf16.xpose.msra.mxu1 %v853_v52  ;;  %1596 = vmatprep.mubr.msk.bf16.mxu1 %vm1760_vm3, %v1759_v19 }
 0x2aa   : > { %1606 = vmatprep.subr.bf16.mxu1 %v1759_v19  ;;  %1578 = vmatprep.mubr.msk.bf16.mxu0 %vm1760_vm3, %v1759_v19 }
 0x2ab   : > { %v971_v53 = vpop.permute.xlu1 %970 }
 0x2ac   : > { %v976_v55 = vsel %vm601_vm4, %v971_v53, 0 }
 0x2b0   : > { %1597 = vmatmul.mubr.msk.bf16.vlgmr.msra.gmra.mrb[4].mxu1 %vm601_vm4, %v846_v54 }
 0x2b1   : > { %1607 = vmatpush3.bf16.xpose.msra.mxu1 %v976_v55  ;;  %1608 = vmatprep.mubr.msk.bf16.mxu1 %vm1760_vm3, %v1759_v19 }
 0x2b2   : > { %1618 = vmatprep.subr.bf16.mxu1 %v1759_v19 }
 0x2b8   : > { %1609 = vmatmul.mubr.msk.bf16.vlgmr.msra.gmra.mrb[8].mxu1 %vm601_vm4, %v969_v56 }
 0x2b9   : > { %1622 = vmatprep.mubr.msk.bf16.mxu1 %vm1760_vm3, %v1759_v19 }
 0x37b   : > { %v642_v62 = vpop.f32.mrb[4].mxu0  ;;  %v766_v63 = vpop.f32.mrb[0].mxu1 }
 0x37c   : > { %v643_v1 = vadd.f32 %v642_v62, %v596_v61  ;;  %v1574_v2 = vpop.f32.mrb[5].mxu0  ;;  %v1586_v4 = vpop.f32.mrb[1].mxu1  ;;  %v767_v12 = vadd.f32 %v766_v63, %v596_v61 }
 0x37d   : > { %v645_v5 = vpop.f32.mrb[6].mxu0  ;;  %v769_v7 = vpop.f32.mrb[2].mxu1 }
 0x37e   : > { %v646_v8 = vadd.f32 %v645_v5, %v597_v0  ;;  %v1575_v9 = vpop.f32.mrb[7].mxu0  ;;  %v1587_v10 = vpop.f32.mrb[3].mxu1  ;;  %v650_v11 = vsel %vm649_vm7, %v643_v1, -inf  ;;  %v770_v15 = vadd.f32 %v769_v7, %v597_v0  ;;  %v773_v18 = vsel %vm649_vm7, %v767_v12, -inf }
 0x37f   : > { %651 = vmax.xlane.f32.xlu1 %v650_v11 }
 0x380   : > { %v653_v13 = vsel %vm649_vm7, %v646_v8, -inf  ;;  %v776_v24 = vsel %vm649_vm7, %v770_v15, -inf }
 0x381   : > { %654 = vmax.xlane.f32.xlu0 %v653_v13 }
 0x383   : > { %v889_v14 = vpop.f32.mrb[4].mxu1 }
 0x384   : > { %v890_v16 = vadd.f32 %v889_v14, %v596_v61  ;;  %v1598_v17 = vpop.f32.mrb[5].mxu1 }
 0x385   : > { %v892_v20 = vpop.f32.mrb[6].mxu1  ;;  %774 = vmax.xlane.f32.xlu0 %v773_v18 }
 0x386   : > { %v1599_v21 = vpop.f32.mrb[7].mxu1  ;;  %v896_v22 = vsel %vm649_vm7, %v890_v16, -inf  ;;  %v893_v23 = vadd.f32 %v892_v20, %v597_v0 }
 0x387   : > { %897 = vmax.xlane.f32.xlu1 %v896_v22 }
 0x388   : > { %v899_v28 = vsel %vm649_vm7, %v893_v23, -inf }
 0x389   : > { %777 = vmax.xlane.f32.xlu0 %v776_v24 }
 0x38b   : > { %v1012_v25 = vpop.f32.mrb[8].mxu1 }
 0x38c   : > { %v1013_v26 = vadd.f32 %v1012_v25, %v596_v61  ;;  %v1610_v27 = vpop.f32.mrb[9].mxu1 }
 0x38d   : > { %v1015_v29 = vpop.f32.mrb[10].mxu1  ;;  %900 = vmax.xlane.f32.xlu0 %v899_v28 }
 0x38e   : > { %v1016_v30 = vadd.f32 %v1015_v29, %v597_v0  ;;  %v1611_v31 = vpop.f32.mrb[11].mxu1  ;;  %v1019_v32 = vsel %vm649_vm7, %v1013_v26, -inf }
 0x38f   : > { %1020 = vmax.xlane.f32.xlu1 %v1019_v32 }
 0x390   : > { %v1022_v33 = vsel %vm649_vm7, %v1016_v30, -inf }
 0x391   : > { %1023 = vmax.xlane.f32.xlu0 %v1022_v33 }
 0x3a0   : > { %675 = vrot.lane.b32.xlu1 %v1907_v45, %s1768_s25 }
 0x40c   : > { %v652_v34 = vpop.xlane.xlu1 %651 }
 0x40d   : > { %v656_v35 = vsub.f32 %v643_v1, %v652_v34 }
 0x40e   : > { %v655_v36 = vpop.xlane.xlu0 %654 }
 0x40f   : > { %v658_v37 = vmul.f32 1.442695, %v656_v35  ;;  %v657_v38 = vsub.f32 %v646_v8, %v655_v36 }
 0x411   : > { %1711 = vpow2.f32 %v658_v37  ;;  %v660_v39 = vmul.f32 1.442695, %v657_v38 }
 0x412   : > { %v775_v40 = vpop.xlane.xlu0 %774 }
 0x413   : > { %1713 = vpow2.f32 %v660_v39  ;;  %v779_v41 = vsub.f32 %v767_v12, %v775_v40 }
 0x414   : > { %v898_v42 = vpop.xlane.xlu1 %897 }
 0x415   : > { %v781_v43 = vmul.f32 1.442695, %v779_v41  ;;  %v902_v44 = vsub.f32 %v890_v16, %v898_v42 }
 0x416   : > { %v778_v46 = vpop.xlane.xlu0 %777 }
 0x417   : > { %1715 = vpow2.f32 %v781_v43  ;;  %v904_v47 = vmul.f32 1.442695, %v902_v44  ;;  %v780_v48 = vsub.f32 %v770_v15, %v778_v46 }
 0x419   : > { %1717 = vpow2.f32 %v904_v47  ;;  %v783_v49 = vmul.f32 1.442695, %v780_v48 }
 0x41a   : > { %v901_v50 = vpop.xlane.xlu0 %900 }
 0x41b   : > { %v1712_v51 = vpop.eup %1711  ;;  %1719 = vpow2.f32 %v783_v49  ;;  %v903_v52 = vsub.f32 %v893_v23, %v901_v50 }
 0x41c   : > { %v1021_v53 = vpop.xlane.xlu1 %1020  ;;  %v662_v54 = vsel %vm649_vm7, %v1712_v51, 0.0 }
 0x41d   : > { %v1714_v55 = vpop.eup %1713  ;;  %v906_v56 = vmul.f32 1.442695, %v903_v52  ;;  %v1025_v57 = vsub.f32 %v1013_v26, %v1021_v53  ;;  %663 = vadd.xlane.f32.xlu1 %v662_v54  ;;  %v1695_v53 = vld [vmem:[%s2074_s6] sm:$0xff]  }
 0x41e   : > { %v1024_v58 = vpop.xlane.xlu0 %1023  ;;  %v665_v59 = vsel %vm649_vm7, %v1714_v55, 0.0  ;;  %1619 = vmatpush3.bf16.msra.mxu1 %v1695_v53  ;;  %v1511_v53 = vld [vmem:[%s2076_s8] ss:$0 sm:$0xff] }
 0x41f   : > { %1721 = vpow2.f32 %v906_v56  ;;  %v1027_v60 = vmul.f32 1.442695, %v1025_v57  ;;  %v1026_v61 = vsub.f32 %v1016_v30, %v1024_v58  ;;  %666 = vadd.xlane.f32.xlu0 %v665_v59  ;;  %1620 = vmatprep.subr.bf16.mxu1 %v1759_v19  ;;  %v1696_v58 = vld [vmem:[%s2074_s6 + $0x8] sm:$0xff]  }
 0x420   : > { %v676_v62 = vpop.permute.xlu1 %675 }
 0x421   : > { %v1716_v63 = vpop.eup %1715  ;;  %1723 = vpow2.f32 %v1027_v60  ;;  %v1029_v0 = vmul.f32 1.442695, %v1026_v61  ;;  %1577 = vmatpush3.bf16.msra.mxu0 %v676_v62 }
 0x422   : > { %v785_v1 = vsel %vm649_vm7, %v1716_v63, 0.0  ;;  %1588 = vmatprep.subr.bf16.mxu0 %v1759_v19  ;;  %1621 = vmatpush3.bf16.msra.mxu1 %v1696_v58 }
 0x423   : > { %v1718_v2 = vpop.eup %1717  ;;  %1725 = vpow2.f32 %v1029_v0  ;;  %786 = vadd.xlane.f32.xlu1 %v785_v1  ;;  %1634 = vmatprep.subr.bf16.mxu1 %v1759_v19 }
 0x424   : > { %v908_v5 = vsel %vm649_vm7, %v1718_v2, 0.0 }
 0x425   : > { %v1720_v4 = vpop.eup %1719 }
 0x426   : > { %v788_v7 = vsel %vm649_vm7, %v1720_v4, 0.0 }
 0x427   : > { %909 = vadd.xlane.f32.xlu1 %v908_v5  ;;  %789 = vadd.xlane.f32.xlu0 %v788_v7 }
 0x429   : > { %v1722_v8 = vpop.eup %1721 }
 0x42a   : > { %v911_v9 = vsel %vm649_vm7, %v1722_v8, 0.0 }
 0x42b   : > { %v1724_v10 = vpop.eup %1723  ;;  %912 = vadd.xlane.f32.xlu0 %v911_v9 }
 0x42c   : > { %v1031_v11 = vsel %vm649_vm7, %v1724_v10, 0.0 }
 0x42d   : > { %v1726_v12 = vpop.eup %1725  ;;  %1032 = vadd.xlane.f32.xlu1 %v1031_v11 }
 0x42e   : > { %v1034_v13 = vsel %vm649_vm7, %v1726_v12, 0.0 }
 0x42f   : > { %1035 = vadd.xlane.f32.xlu0 %v1034_v13 }
 0x43e   : > { %921 = vrot.lane.b32.xlu1 %v1907_v45, %s1769_s26 }
 0x442   : > { %1044 = vrot.lane.b32.xlu1 %v1907_v45, %s1770_s27 }
 0x445   : > { %798 = vrot.lane.b32.xlu0 %v1907_v45, %s1771_s28 }
 0x4aa   : > { %v664_v14 = vpop.xlane.xlu1 %663 }
 0x4ab   : > { %1727 = vrcp.f32 %v664_v14 }
 0x4ac   : > { %v667_v15 = vpop.xlane.xlu0 %666 }
 0x4ad   : > { %1729 = vrcp.f32 %v667_v15 }
 0x4b0   : > { %v787_v16 = vpop.xlane.xlu1 %786 }
 0x4b1   : > { %1731 = vrcp.f32 %v787_v16 }
 0x4b4   : > { %v790_v17 = vpop.xlane.xlu0 %789  ;;  %v910_v24 = vpop.xlane.xlu1 %909 }
 0x4b5   : > { %v1728_v18 = vpop.eup %1727  ;;  %1733 = vrcp.f32 %v790_v17 }
 0x4b6   : > { %v672_v21 = vmul.f32 %v1728_v18, %v1712_v51 }
 0x4b7   : > { %v1730_v20 = vpop.eup %1729 }
 0x4b8   : > { %v673_v22 = vmul.f32 %v1730_v20, %v1714_v55  ;;  %v913_v23 = vpop.xlane.xlu0 %912 }
 0x4b9   : > { %1735 = vrcp.f32 %v913_v23 }
 0x4ba   : > { %v674_v25 = vpack.c.bf16 %v673_v22, %v672_v21  ;;  %1737 = vrcp.f32 %v910_v24  ;;  %v1033_v27 = vpop.xlane.xlu1 %1032  ;;  %v1507_v22 = vld [vmem:[%s2075_s7] ss:$0 sm:$0xff] }
 0x4bb   : > { %v1732_v26 = vpop.eup %1731 }
 0x4bc   : > { %1579 = vmatmul.mubr.msk.bf16.vlgmr.msra.gmra.mrb[8].mxu0 %vm649_vm7, %v674_v25  ;;  %v1036_v45 = vpop.xlane.xlu0 %1035  ;;  %v795_v30 = vmul.f32 %v1732_v26, %v1716_v63 }
 0x4bd   : > { %1590 = vmatprep.mubr.msk.bf16.mxu0 %vm1760_vm3, %v1759_v19  ;;  %1739 = vrcp.f32 %v1036_v45 }
 0x4be   : > { %1741 = vrcp.f32 %v1033_v27  ;;  %v922_v34 = vpop.permute.xlu1 %921 }
 0x4bf   : > { %v1734_v28 = vpop.eup %1733 }
 0x4c0   : > { %v799_v29 = vpop.permute.xlu0 %798  ;;  %v796_v31 = vmul.f32 %v1734_v28, %v1720_v4 }
 0x4c1   : > { %1589 = vmatpush3.bf16.msra.mxu0 %v799_v29 }
 0x4c2   : > { %1600 = vmatprep.subr.bf16.mxu0 %v1759_v19  ;;  %v797_v32 = vpack.c.bf16 %v796_v31, %v795_v30  ;;  %v1045_v40 = vpop.permute.xlu1 %1044 }
 0x4c3   : > { %v1736_v33 = vpop.eup %1735 }
 0x4c4   : > { %1591 = vmatmul.mubr.msk.bf16.vlgmr.msra.gmra.mrb[12].mxu0 %vm649_vm7, %v797_v32  ;;  %v1738_v35 = vpop.eup %1737  ;;  %v919_v36 = vmul.f32 %v1736_v33, %v1722_v8 }
 0x4c5   : > { %1601 = vmatpush3.bf16.msra.mxu0 %v922_v34  ;;  %1602 = vmatprep.mubr.msk.bf16.mxu0 %vm1760_vm3, %v1759_v19  ;;  %v918_v37 = vmul.f32 %v1738_v35, %v1718_v2 }
 0x4c6   : > { %1612 = vmatprep.subr.bf16.mxu0 %v1759_v19 }
 0x4c7   : > { %v920_v38 = vpack.c.bf16 %v919_v36, %v918_v37  ;;  %v1740_v39 = vpop.eup %1739 }
 0x4c8   : > { %v1742_v41 = vpop.eup %1741  ;;  %v1042_v42 = vmul.f32 %v1740_v39, %v1726_v12 }
 0x4c9   : > { %v1041_v43 = vmul.f32 %v1742_v41, %v1724_v10  ;;  %v1698_v41 = vld [vmem:[%s2078_s10 + $0x8] sm:$0xff]  }
 0x4cb   : > { %v1043_v44 = vpack.c.bf16 %v1042_v42, %v1041_v43  ;;  %v1699_v42 = vld [vmem:[%s2080_s12] sm:$0xff]   ;;  %v1700_v43 = vld [vmem:[%s2080_s12 + $0x8] sm:$0xff]  }
 0x4cc   : > { %1603 = vmatmul.mubr.msk.bf16.vlgmr.msra.gmra.mrb[16].mxu0 %vm649_vm7, %v920_v38 }
 0x4cd   : > { %1613 = vmatpush3.bf16.msra.mxu0 %v1045_v40  ;;  %1614 = vmatprep.mubr.msk.bf16.mxu0 %vm1760_vm3, %v1759_v19  ;;  %v1697_v40 = vld [vmem:[%s2078_s10] sm:$0xff]  }
 0x4ce   : > { %1626 = vmatprep.subr.bf16.mxu0 %v1759_v19 }
 0x4d4   : > { %1615 = vmatmul.mubr.msk.bf16.vlgmr.msra.gmra.mrb[20].mxu0 %vm649_vm7, %v1043_v44 }
 0x4d5   : > { %1630 = vmatprep.mubr.msk.bf16.mxu0 %vm1760_vm3, %v1759_v19  ;;  %1627 = vmatpush3.bf16.msra.mxu0 %v1697_v40 }
 0x4d6   : > { %1628 = vmatprep.subr.bf16.mxu0 %v1759_v19 }
 0x4d9   : > { %1629 = vmatpush3.bf16.msra.mxu0 %v1698_v41 }
 0x58f   : > { %v715_v46 = vpop.f32.mrb[8].mxu0 }
 0x590   : > { %v1580_v47 = vpop.f32.mrb[9].mxu0 }
 0x591   : > { %v718_v48 = vpop.f32.mrb[10].mxu0 }
 0x592   : > { %v1581_v49 = vpop.f32.mrb[11].mxu0 }
 0x597   : > { %v838_v50 = vpop.f32.mrb[12].mxu0 }
 0x598   : > { %v1592_v51 = vpop.f32.mrb[13].mxu0 }
 0x599   : > { %v841_v52 = vpop.f32.mrb[14].mxu0 }
 0x59a   : > { %v1678_v54 = vpack.i.bf16 %v841_v52, %v838_v50  ;;  %v1593_v55 = vpop.f32.mrb[15].mxu0 }
 0x59c   : > { %1679 = vrot.lane.b32.xlu1 %v1678_v54, %s1772_s18 }
 0x59f   : > { %v961_v56 = vpop.f32.mrb[16].mxu0 }
 0x5a0   : > { %v1604_v57 = vpop.f32.mrb[17].mxu0 }
 0x5a1   : > { %v964_v59 = vpop.f32.mrb[18].mxu0  ;;  %v1512_v57 = vld [vmem:[%s2077_s9] ss:$0 sm:$0xff] }
 0x5a2   : > { %v1683_v60 = vpack.i.bf16 %v964_v59, %v961_v56  ;;  %v1605_v61 = vpop.f32.mrb[19].mxu0 }
 0x5a4   : > { %1684 = vrot.lane.b32.xlu0 %v1683_v60, %s1773_s21 }
 0x5a7   : > { %v1084_v62 = vpop.f32.mrb[20].mxu0 }
 0x5a8   : > { %v1616_v63 = vpop.f32.mrb[21].mxu0 }
 0x5a9   : > { %v1087_v0 = vpop.f32.mrb[22].mxu0  ;;  %v1702_v63 = vld [vmem:[%s2080_s12 + $0x18] sm:$0xff]  }
 0x5aa   : > { %v1688_v1 = vpack.i.bf16 %v1087_v0, %v1084_v62  ;;  %v1617_v2 = vpop.f32.mrb[23].mxu0  ;;  %v1701_v62 = vld [vmem:[%s2080_s12 + $0x10] sm:$0xff]   ;;  %v1703_v0 = vld [vmem:[%s2080_s12 + $0x20] sm:$0xff]  }
 0x5ab   : > { %v1705_v2 = vld [vmem:[%s2080_s12 + $0x30] sm:$0xff]  }
 0x5ac   : > { %1689 = vrot.lane.b32.xlu1 %v1688_v1, %s1774_s22  ;;  %v1704_v1 = vld [vmem:[%s2080_s12 + $0x28] sm:$0xff]  }
 0x60e   : > { %v1680_v4 = vpop.permute.xlu1 %1679 }
 0x60f   : > { %v1682_v7 = vunpack.i.h.bf16 %v1680_v4  ;;  %v1681_v8 = vunpack.i.l.bf16 %v1680_v4  ;;  %v1706_v4 = vld [vmem:[%s2080_s12 + $0x38] sm:$0xff]  }
 0x611   : > { %v1116_v12 = vsel %vm601_vm4, %v718_v48, %v1682_v7  ;;  %v1115_v13 = vsel %vm601_vm4, %v715_v46, %v1681_v8 }
 0x616   : > { %v1685_v5 = vpop.permute.xlu0 %1684 }
 0x617   : > { %v1687_v9 = vunpack.i.h.bf16 %v1685_v5  ;;  %v1686_v10 = vunpack.i.l.bf16 %v1685_v5  ;;  %v1513_v5 = vld [vmem:[%s2079_s11] ss:$0 sm:$0xff] }
 0x619   : > { %v1118_v16 = vsel %vm649_vm7, %v1116_v12, %v1687_v9  ;;  %v1117_v17 = vsel %vm649_vm7, %v1115_v13, %v1686_v10 }
 0x61e   : > { %v1690_v11 = vpop.permute.xlu1 %1689 }
 0x61f   : > { %v1692_v14 = vunpack.i.h.bf16 %v1690_v11  ;;  %v1691_v15 = vunpack.i.l.bf16 %v1690_v11 }
 0x621   : > { %v1121_v18 = vsel %vm1119_vm8, %v1118_v16, %v1692_v14  ;;  %v1120_v20 = vsel %vm1119_vm8, %v1117_v17, %v1691_v15 }
 0x622   : > { %v1122_v21 = vpack.c.bf16 %v1121_v18, %v1120_v20 }
 0x624   : > { %1623 = vmatmul.mubr.msk.bf16.vlgmr.msra.gmra.mrb[12].mxu1 %vm476_vm1, %v1122_v21 }
 0x625   : > { %1650 = vmatprep.mubr.msk.bf16.mxu1 %vm1760_vm3, %v1759_v19  ;;  %1635 = vmatpush3.bf16.msra.mxu1 %v1699_v42 }
 0x626   : > { %1636 = vmatprep.subr.bf16.mxu1 %v1759_v19 }
 0x629   : > { %1637 = vmatpush3.bf16.msra.mxu1 %v1700_v43 }
 0x62a   : > { %1638 = vmatprep.subr.bf16.mxu1 %v1759_v19 }
 0x62d   : > { %1639 = vmatpush3.bf16.msra.mxu1 %v1701_v62 }
 0x62e   : > { %1640 = vmatprep.subr.bf16.mxu1 %v1759_v19 }
 0x631   : > { %1641 = vmatpush3.bf16.msra.mxu1 %v1702_v63 }
 0x632   : > { %1642 = vmatprep.subr.bf16.mxu1 %v1759_v19 }
 0x635   : > { %1643 = vmatpush3.bf16.msra.mxu1 %v1703_v0 }
 0x636   : > { %1644 = vmatprep.subr.bf16.mxu1 %v1759_v19 }
 0x639   : > { %1645 = vmatpush3.bf16.msra.mxu1 %v1704_v1 }
 0x63a   : > { %1646 = vmatprep.subr.bf16.mxu1 %v1759_v19 }
 0x63d   : > { %1647 = vmatpush3.bf16.msra.mxu1 %v1705_v2 }
 0x63e   : > { %1648 = vmatprep.subr.bf16.mxu1 %v1759_v19 }
 0x641   : > { %1649 = vmatpush3.bf16.msra.mxu1 %v1706_v4 }
 0x6f7   : > { %v1183_v23 = vpop.f32.mrb[12].mxu1 }
 0x6f8   : > { %v1184_v24 = vadd.f32 %v1507_v22, %v1183_v23  ;;  %v1624_v25 = vpop.f32.mrb[13].mxu1 }
 0x6f9   : > { %v1186_v45 = vpop.f32.mrb[14].mxu1 }
 0x6fa   : > { %v1994_v26 = vadd.f32 %v1184_v24, %v1869_v3  ;;  %v1187_v27 = vadd.f32 %v1507_v22, %v1186_v45  ;;  %v1625_v28 = vpop.f32.mrb[15].mxu1  ;;  %v1517_v24 = vld [vmem:[%s2081_s13] ss:$0 sm:$0xff] }
 0x6fc   : > { %v1997_v29 = vadd.f32 %v1187_v27, %v1873_v6  ;;  %v1194_v30 = vsel %vm476_vm1, %v1994_v26, 0.0 }
 0x6fd   : > { %1195 = vadd.xlane.f32.xlu0 %v1194_v30 }
 0x6fe   : > { %v1197_v31 = vsel %vm476_vm1, %v1997_v29, 0.0 }
 0x6ff   : > { %1198 = vadd.xlane.f32.xlu1 %v1197_v31 }
 0x78a   : > { %v1196_v32 = vpop.xlane.xlu0 %1195 }
 0x78b   : > { %v1200_v33 = vmul.f32 0.03125, %v1196_v32 }
 0x78c   : > { %v1199_v34 = vpop.xlane.xlu1 %1198 }
 0x78d   : > { %v1202_v35 = vsub.f32 %v1994_v26, %v1200_v33  ;;  %v1201_v3 = vmul.f32 0.03125, %v1199_v34 }
 0x78f   : > { %v1203_v36 = vsub.f32 %v1997_v29, %v1201_v3  ;;  %v1204_v37 = vmul.f32 %v1202_v35, %v1202_v35 }
 0x791   : > { %v1206_v6 = vsel %vm476_vm1, %v1204_v37, 0.0  ;;  %v1205_v38 = vmul.f32 %v1203_v36, %v1203_v36 }
 0x792   : > { %1207 = vadd.xlane.f32.xlu0 %v1206_v6 }
 0x793   : > { %v1209_v39 = vsel %vm476_vm1, %v1205_v38, 0.0 }
 0x796   : > { %1210 = vadd.xlane.f32.xlu0 %v1209_v39 }
 0x81f   : > { %v1208_v44 = vpop.xlane.xlu0 %1207 }
 0x820   : > { %v1212_v46 = vmul.f32 0.03125, %v1208_v44 }
 0x822   : > { %v1214_v47 = vadd.f32 1e-05, %v1212_v46 }
 0x823   : > { %v1211_v48 = vpop.xlane.xlu0 %1210 }
 0x824   : > { %1743 = vrsqrt.f32 %v1214_v47  ;;  %v1213_v49 = vmul.f32 0.03125, %v1211_v48 }
 0x826   : > { %v1215_v50 = vadd.f32 1e-05, %v1213_v49 }
 0x828   : > { %1745 = vrsqrt.f32 %v1215_v50 }
 0x82e   : > { %v1744_v51 = vpop.eup %1743 }
 0x82f   : > { %v1218_v52 = vmul.f32 %v1744_v51, %v1202_v35 }
 0x831   : > { %v1226_v55 = vmul.f32 %v1511_v53, %v1218_v52 }
 0x832   : > { %v1746_v54 = vpop.eup %1745 }
 0x833   : > { %v1219_v56 = vmul.f32 %v1746_v54, %v1203_v36  ;;  %v1234_v59 = vadd.f32 %v1512_v57, %v1226_v55 }
 0x835   : > { %v1227_v58 = vmul.f32 %v1511_v53, %v1219_v56 }
 0x837   : > { %v1235_v60 = vadd.f32 %v1512_v57, %v1227_v58 }
 0x839   : > { %v1236_v61 = vpack.c.bf16 %v1235_v60, %v1234_v59 }
 0x83b   : > { %1631 = vmatmul.mubr.msk.bf16.vlgmr.msra.gmra.mrb[24].mxu0 %vm476_vm1, %v1236_v61 }
 0x90e   : > { %v1297_v7 = vpop.f32.mrb[24].mxu0 }
 0x90f   : > { %v1298_v8 = vadd.f32 %v1513_v5, %v1297_v7  ;;  %v1632_v9 = vpop.f32.mrb[25].mxu0 }
 0x910   : > { %v1300_v10 = vpop.f32.mrb[26].mxu0 }
 0x911   : > { %v1304_v11 = vmul.f32 0.851, %v1298_v8  ;;  %v1301_v12 = vadd.f32 %v1513_v5, %v1300_v10  ;;  %v1633_v13 = vpop.f32.mrb[27].mxu0 }
 0x913   : > { %1747 = vtanh.f32 %v1304_v11  ;;  %v1305_v14 = vmul.f32 0.851, %v1301_v12 }
 0x915   : > { %1749 = vtanh.f32 %v1305_v14 }
 0x91d   : > { %v1748_v19 = vpop.eup %1747 }
 0x91e   : > { %v1308_v15 = vadd.f32 1.0, %v1748_v19 }
 0x91f   : > { %v1750_v16 = vpop.eup %1749 }
 0x920   : > { %v1310_v17 = vmul.f32 0.5, %v1308_v15  ;;  %v1309_v18 = vadd.f32 1.0, %v1750_v16 }
 0x922   : > { %v1311_v20 = vmul.f32 0.5, %v1309_v18  ;;  %v1312_v21 = vmul.f32 %v1310_v17, %v1298_v8 }
 0x924   : > { %v1313_v22 = vmul.f32 %v1311_v20, %v1301_v12 }
 0x926   : > { %v1314_v23 = vpack.c.bf16 %v1313_v22, %v1312_v21 }
 0x928   : > { %1651 = vmatmul.mubr.bf16.vlgmr.msra.gmra.mrb[16].mxu1 %v1314_v23 }
 0x9fb   : > { %v1420_v25 = vpop.f32.mrb[16].mxu1 }
 0x9fc   : > { %v1421_v45 = vadd.f32 %v1517_v24, %v1420_v25  ;;  %v1652_v27 = vpop.f32.mrb[17].mxu1 }
 0x9fd   : > { %v1423_v28 = vpop.f32.mrb[18].mxu1 }
 0x9fe   : > { %v1427_v30 = vadd.f32 %v1421_v45, %v1994_v26  ;;  %v1424_v31 = vadd.f32 %v1517_v24, %v1423_v28  ;;  %v1653_v32 = vpop.f32.mrb[19].mxu1 }
 0xa00   : > { %1430 = vst.msk [vmem:[%s462_s16 - $0x2] sm:$0xfc] %vm1429_vm9, %v1427_v30  ;;  %v1428_v33 = vadd.f32 %v1424_v31, %v1997_v29 }
 0xa02   : > { %1432 = vst.msk [vmem:[%s462_s16 + $0x6] sm:$0x3] %vm1431_vm10, %v1428_v33 }
 0xa03 PF: > { %s24_s29 = sadd.s32 1, %s1757_s29  }
 0xa04   : > { %p21_p4 = scmp.ge.s32.totalorder %s24_s29, 4  }
 0xa06   :  { %23 = sbr.rel (!%p21_p4) target bundleno = 1 (0x1), region = 106 }

</bundles_post_ra>
